<compile_context>
chip_gen: v7x
topology: tpu7x:2x2x1
jax: 0.10.0
libtpu: 0.0.40
codegen_flags: <defaults>
</compile_context>

<pallas_src>
import functools

import jax
import jax.numpy as jnp
from jax.experimental import pallas as pl
from jax.experimental.pallas import tpu as pltpu

LANES = 128
TARGET_BLOCK_ROWS = 2048   # (2048, 128) f32 tile = 1 MiB per input stream
NCORE_SPLIT = 2            # outer "parallel" axis, used only on 2-TC chips


def _num_tensorcores_per_chip():
    """2 on v7x-class chips (2 TensorCores), 1 on v5e/v6e (single TC)."""
    try:
        kind = jax.devices()[0].device_kind.lower()
    except Exception:
        return 1
    return 2 if "v7" in kind else 1


def _bce_terms(s, t):
    """Elementwise clamped BCE, PyTorch BCELoss semantics, f32 math."""
    s = s.astype(jnp.float32)
    t = t.astype(jnp.float32)
    log_s = jnp.maximum(jnp.log(s), -100.0)
    log_1ms = jnp.maximum(jnp.log(1.0 - s), -100.0)
    # == -(t * log_s + (1 - t) * log_1ms), but only 3 VALU ops after the
    # two EUP logs (the logs sit in a separate bundle slot).
    return t * (log_1ms - log_s) - log_1ms


def _bce_sum_jnp(s, t):
    return jnp.sum(_bce_terms(s, t))


def _bce_partial_kernel(s_ref, t_ref, o_ref, acc_ref):
    """Accumulate per-lane BCE partial sums over the inner (reduction) axis."""
    i = pl.program_id(1)

    @pl.when(i == 0)
    def _():
        acc_ref[...] = jnp.zeros_like(acc_ref)

    bce = _bce_terms(s_ref[...], t_ref[...])          # (block_rows, 128) f32
    block_rows = bce.shape[0]
    # Sublane vreg-add tree: group consecutive (8,128) vregs and reduce the
    # leading (vreg-index) dim -> one vreg of partial sums; pure VPU, no XLU.
    acc_ref[...] += jnp.sum(bce.reshape(block_rows // 8, 8, LANES), axis=0)

    @pl.when(i == pl.num_programs(1) - 1)
    def _():
        # Single full, unmasked lane-dense store of this core's partials.
        o_ref[...] = acc_ref[...]


@functools.partial(jax.jit, static_argnames=("param_weight",))
def simple_bce_pallas(preds_S, preds_T, param_weight=1.0):
    """BCELoss(preds_S, preds_T).mean() * param_weight via a Pallas TPU kernel."""
    assert preds_S.shape == preds_T.shape
    n_elems = preds_S.size
    dtype_bytes = jnp.dtype(preds_S.dtype).itemsize

    # Flatten (free bitcast for contiguous row-major arrays); keep input dtype
    # so bf16 activations stream at half the HBM bytes (upcast in-tile).
    s_flat = preds_S.reshape(-1)
    t_flat = preds_T.reshape(-1)

    rows = n_elems // LANES
    lane_tail = n_elems - rows * LANES
    if lane_tail:
        # Lane-ragged sizes only: one pad-to-next-128 copy. The zero padding
        # contributes exactly 0 loss (clamped logs, T = 0).
        pad = LANES - lane_tail
        s_flat = jnp.pad(s_flat, (0, pad))
        t_flat = jnp.pad(t_flat, (0, pad))
        rows += 1

    # Free 2-D lane-dense view of the whole stream.
    s2d = s_flat.reshape(rows, LANES)
    t2d = t_flat.reshape(rows, LANES)

    # Tiling (all static Python ints under jit).
    n_tc = _num_tensorcores_per_chip()
    n_split = NCORE_SPLIT if (n_tc >= NCORE_SPLIT and rows >= NCORE_SPLIT * 8) else 1
    rows_per_split = rows // n_split
    inner = max(1, pl.cdiv(rows_per_split, TARGET_BLOCK_ROWS))
    block_rows = (rows_per_split // inner) // 8 * 8

    total = jnp.float32(0.0)
    rows_main = 0

    if block_rows > 0:
        rows_main = n_split * inner * block_rows
        kernel_elems = rows_main * LANES

        def in_map(c, i):
            return (c * inner + i, 0)

        cost = pl.CostEstimate(
            flops=6 * kernel_elems,
            transcendentals=2 * kernel_elems,
            bytes_accessed=2 * kernel_elems * dtype_bytes + n_split * 8 * LANES * 4,
        )

        partials = pl.pallas_call(
            _bce_partial_kernel,
            out_shape=jax.ShapeDtypeStruct((n_split * 8, LANES), jnp.float32),
            grid_spec=pltpu.PrefetchScalarGridSpec(
                num_scalar_prefetch=0,
                grid=(n_split, inner),
                in_specs=[
                    pl.BlockSpec((block_rows, LANES), in_map),
                    pl.BlockSpec((block_rows, LANES), in_map),
                ],
                out_specs=pl.BlockSpec((8, LANES), lambda c, i: (c, 0)),
                scratch_shapes=[pltpu.VMEM((8, LANES), jnp.float32)],
            ),
            compiler_params=pltpu.CompilerParams(
                dimension_semantics=("parallel", "arbitrary"),
            ),
            cost_estimate=cost,
        )(s2d, t2d)
        total = jnp.sum(partials)

    # Row tail (rows not covered by the block-divisible prefix) and the
    # tiny-input fallback (rows < 8 per split) are summed with plain jnp
    # from a small tail slice — no full-array copy on the common path.
    if rows_main < rows:
        total = total + _bce_sum_jnp(s2d[rows_main:, :], t2d[rows_main:, :])

    mean_loss = total / jnp.float32(n_elems)
    return mean_loss * jnp.float32(param_weight)


def _bce_reference(preds_S, preds_T, param_weight=1.0):
    s = preds_S.astype(jnp.float32)
    t = preds_T.astype(jnp.float32)
    log_s = jnp.maximum(jnp.log(s), -100.0)
    log_1ms = jnp.maximum(jnp.log(1.0 - s), -100.0)
    loss = -(t * log_s + (1.0 - t) * log_1ms)
    return jnp.mean(loss) * param_weight


if __name__ == "__main__":
    key = jax.random.PRNGKey(0)
    k1, k2 = jax.random.split(key)

    # NCHW inputs, matching the PyTorch module's conv-feature convention.
    B, C, H, W = 2, 4, 16, 16
    # preds_S / preds_T must be probabilities in (0, 1) for BCELoss.
    preds_S = jax.nn.sigmoid(jax.random.normal(k1, (B, C, H, W), jnp.float32))
    preds_T = jax.nn.sigmoid(jax.random.normal(k2, (B, C, H, W), jnp.float32))

    param_weight = 1.0  # deterministic module "parameter" (__init__ default)

    out = simple_bce_pallas(preds_S, preds_T, param_weight=param_weight)
    out = jax.block_until_ready(out)

    ref = _bce_reference(preds_S, preds_T, param_weight)
    assert jnp.allclose(out, ref, rtol=1e-5, atol=1e-5), (out, ref)

    print("KERNEL_OK")
</pallas_src>

<mosaic_0001>
module attributes {stable_mosaic.version = 11 : i64} {
  func.func @_bce_partial_kernel(%arg0: i32, %arg1: i32, %arg2: memref<16x128xf32, #tpu.memory_space<vmem>>, %arg3: memref<16x128xf32, #tpu.memory_space<vmem>>, %arg4: memref<8x128xf32, #tpu.memory_space<vmem>>, %arg5: memref<8x128xf32, #tpu.memory_space<vmem>>) attributes {dimension_semantics = [#tpu.dimension_semantics<parallel>, #tpu.dimension_semantics<arbitrary>], iteration_bounds = array<i64: 1, 1>, scalar_prefetch = 0 : i64, scratch_operands = 1 : i64, tpu.core_type = #tpu.core_type<tc>, window_params = [{transform_indices = @transform_0, window_bounds = array<i64: 16, 128>}, {transform_indices = @transform_1, window_bounds = array<i64: 16, 128>}, {transform_indices = @transform_2, window_bounds = array<i64: 8, 128>}]} {
    %c0_i32 = arith.constant 0 : i32
    %0 = arith.cmpi eq, %arg1, %c0_i32 : i32
    %1 = arith.extui %0 : i1 to i32
    %c0_i32_0 = arith.constant 0 : i32
    %2 = arith.cmpi ne, %1, %c0_i32_0 : i32
    scf.if %2 {
      %cst_13 = arith.constant 0.000000e+00 : f32
      %24 = vector.broadcast %cst_13 : f32 to vector<8x128xf32>
      %c0_14 = arith.constant 0 : index
      %c0_15 = arith.constant 0 : index
      %25 = vector.load %arg5[%c0_14, %c0_15] : memref<8x128xf32, #tpu.memory_space<vmem>>, vector<8x128xf32>
      tpu.vector_store %arg5[%c0_14, %c0_15], %24 {strides = array<i32>} : memref<8x128xf32, #tpu.memory_space<vmem>>, vector<8x128xf32>,
    } else {
    }
    %c0 = arith.constant 0 : index
    %c0_1 = arith.constant 0 : index
    %3 = vector.load %arg2[%c0, %c0_1] : memref<16x128xf32, #tpu.memory_space<vmem>>, vector<16x128xf32>
    %c0_2 = arith.constant 0 : index
    %c0_3 = arith.constant 0 : index
    %4 = vector.load %arg3[%c0_2, %c0_3] : memref<16x128xf32, #tpu.memory_space<vmem>>, vector<16x128xf32>
    %5 = math.log %3 : vector<16x128xf32>
    %cst = arith.constant -1.000000e+02 : f32
    %6 = vector.broadcast %cst : f32 to vector<16x128xf32>
    %7 = arith.maximumf %5, %6 : vector<16x128xf32>
    %cst_4 = arith.constant 1.000000e+00 : f32
    %8 = vector.broadcast %cst_4 : f32 to vector<16x128xf32>
    %9 = arith.subf %8, %3 : vector<16x128xf32>
    %10 = math.log %9 : vector<16x128xf32>
    %cst_5 = arith.constant -1.000000e+02 : f32
    %11 = vector.broadcast %cst_5 : f32 to vector<16x128xf32>
    %12 = arith.maximumf %10, %11 : vector<16x128xf32>
    %13 = arith.subf %12, %7 : vector<16x128xf32>
    %14 = arith.mulf %4, %13 : vector<16x128xf32>
    %15 = arith.subf %14, %12 : vector<16x128xf32>
    %c0_6 = arith.constant 0 : index
    %c0_7 = arith.constant 0 : index
    %16 = vector.load %arg5[%c0_6, %c0_7] : memref<8x128xf32, #tpu.memory_space<vmem>>, vector<8x128xf32>
    %17 = vector.shape_cast %15 : vector<16x128xf32> to vector<2x8x128xf32>
    %cst_8 = arith.constant dense<0.000000e+00> : vector<8x128xf32>
    %18 = vector.multi_reduction <add>, %17, %cst_8 [0] : vector<2x8x128xf32> to vector<8x128xf32>
    %19 = arith.addf %16, %18 : vector<8x128xf32>
    %c0_9 = arith.constant 0 : index
    %c0_10 = arith.constant 0 : index
    %20 = vector.load %arg5[%c0_9, %c0_10] : memref<8x128xf32, #tpu.memory_space<vmem>>, vector<8x128xf32>
    tpu.vector_store %arg5[%c0_9, %c0_10], %19 {strides = array<i32>} : memref<8x128xf32, #tpu.memory_space<vmem>>, vector<8x128xf32>,
    %c0_i32_11 = arith.constant 0 : i32
    %21 = arith.cmpi eq, %arg1, %c0_i32_11 : i32
    %22 = arith.extui %21 : i1 to i32
    %c0_i32_12 = arith.constant 0 : i32
    %23 = arith.cmpi ne, %22, %c0_i32_12 : i32
    scf.if %23 {
      %c0_13 = arith.constant 0 : index
      %c0_14 = arith.constant 0 : index
      %24 = vector.load %arg5[%c0_13, %c0_14] : memref<8x128xf32, #tpu.memory_space<vmem>>, vector<8x128xf32>
      %c0_15 = arith.constant 0 : index
      %c0_16 = arith.constant 0 : index
      %25 = vector.load %arg4[%c0_15, %c0_16] : memref<8x128xf32, #tpu.memory_space<vmem>>, vector<8x128xf32>
      tpu.vector_store %arg4[%c0_15, %c0_16], %24 {strides = array<i32>} : memref<8x128xf32, #tpu.memory_space<vmem>>, vector<8x128xf32>,
    } else {
    }
    return
  }
  func.func @transform_0(%arg0: i32, %arg1: i32) -> (i32, i32) {
    %c1_i32 = arith.constant 1 : i32
    %0 = arith.muli %arg0, %c1_i32 : i32
    %1 = arith.addi %0, %arg1 : i32
    %c0_i32 = arith.constant 0 : i32
    %c0_i32_0 = arith.constant 0 : i32
    return %1, %c0_i32 : i32, i32
  }
  func.func @transform_1(%arg0: i32, %arg1: i32) -> (i32, i32) {
    %c1_i32 = arith.constant 1 : i32
    %0 = arith.muli %arg0, %c1_i32 : i32
    %1 = arith.addi %0, %arg1 : i32
    %c0_i32 = arith.constant 0 : i32
    %c0_i32_0 = arith.constant 0 : i32
    return %1, %c0_i32 : i32, i32
  }
  func.func @transform_2(%arg0: i32, %arg1: i32) -> (i32, i32) {
    %c0_i32 = arith.constant 0 : i32
    %c0_i32_0 = arith.constant 0 : i32
    return %arg0, %c0_i32 : i32, i32
  }
}

</mosaic_0001>

<bundles_post_ra>
// kernel: simple_bce_pallas.1
= control target key start
LH: loop header
LB: loop body
LE: loop exit
PB: predicated region body
PF: predicated region fallthrough
CT: control target
= control target key end

     0   :  { %s147_s0 = inlined_call_operand.vmem [shape: f32[16,128], index: 0, kind: input, shape index: {}]   ;;  %s148_s1 = inlined_call_operand.vmem [shape: f32[16,128], index: 1, kind: input, shape index: {}]   ;;  %s149_s2 = inlined_call_operand.vmem [shape: f32[8,128], index: 2, kind: output, shape index: {}]  }
   0x1   :  { %v60_v0 = vld [vmem:[%s147_s0] sm:$0xff]  ;;  %v61_v1 = vld [vmem:[%s147_s0 + $0x8] sm:$0xff] }
   0x2   :  { %109 = vlog2.f32 %v60_v0  ;;  %v70_v2 = vsub.f32 1.0, %v60_v0  ;;  %v71_v3 = vsub.f32 1.0, %v61_v1  ;;  %v62_v15 = vld [vmem:[%s148_s1] sm:$0xff]  ;;  %v63_v17 = vld [vmem:[%s148_s1 + $0x8] sm:$0xff] }
   0x3   :  { %111 = vlog2.f32 %v61_v1 }
   0x4   :  { %113 = vlog2.f32 %v70_v2 }
   0x5   :  { %115 = vlog2.f32 %v71_v3 }
   0xc   :  { %v110_v4 = vpop.eup %109 }
   0xd   :  { %v112_v5 = vpop.eup %111  ;;  %v65_v6 = vmul.f32 0.6931472, %v110_v4 }
   0xe   :  { %v114_v7 = vpop.eup %113  ;;  %v67_v8 = vmul.f32 0.6931472, %v112_v5 }
   0xf   :  { %v116_v9 = vpop.eup %115  ;;  %v68_v10 = vmax.f32 %v65_v6, -100.0  ;;  %v73_v11 = vmul.f32 0.6931472, %v114_v7 }
  0x10   :  { %v69_v12 = vmax.f32 %v67_v8, -100.0  ;;  %v75_v13 = vmul.f32 0.6931472, %v116_v9 }
  0x11   :  { %v76_v14 = vmax.f32 %v73_v11, -100.0 }
  0x12   :  { %v77_v16 = vmax.f32 %v75_v13, -100.0 }
  0x13   :  { %v78_v18 = vsub.f32 %v76_v14, %v68_v10 }
  0x14   :  { %v79_v19 = vsub.f32 %v77_v16, %v69_v12 }
  0x15   :  { %v80_v20 = vmul.f32 %v78_v18, %v62_v15 }
  0x16   :  { %v81_v21 = vmul.f32 %v79_v19, %v63_v17 }
  0x17   :  { %v82_v22 = vsub.f32 %v80_v20, %v76_v14 }
  0x18   :  { %v83_v23 = vsub.f32 %v81_v21, %v77_v16 }
  0x1a   :  { %v85_v24 = vadd.f32 %v83_v23, %v82_v22 }
  0x1c   :  { %92 = vst [vmem:[%s149_s2] sm:$0xff] %v85_v24 }

</bundles_post_ra>
